<compile_context>
chip_gen: v7x
topology: tpu7x:2x2x1
jax: 0.10.0
libtpu: 0.0.40
codegen_flags: <defaults>
</compile_context>

<pallas_src>
import functools
import math

import jax
import jax.numpy as jnp
from jax.experimental import pallas as pl
from jax.experimental.pallas import tpu as pltpu

LN_EPS = 1e-5                 # PyTorch nn.LayerNorm default
NEG_INF = -1e9                # finite mask fill (no NaN on fully padded rows)
MATMUL_DTYPE = jnp.bfloat16   # MXU input dtype (f32 accumulation kept)


# --------------------------------------------------------------------------
# helpers
# --------------------------------------------------------------------------
def _row_granule(*dtypes):
    """Sublane granule for second-to-last block dims: 8 (f32), 16 (bf16), 32 (i8)."""
    g = 8
    for dt in dtypes:
        size = jnp.dtype(dt).itemsize
        g = max(g, 8 * max(1, 4 // size))
    return g


def _pick_tile(dim, target, granule, min_steps=1):
    """Largest multiple-of-`granule` divisor of `dim` that is <= target and (if
    possible) yields >= min_steps grid steps; falls back to the full dim, which
    is always a legal block."""
    divisors = [d for d in range(granule, dim + 1, granule) if dim % d == 0]
    if not divisors:
        return dim
    ok = [d for d in divisors if d <= target and dim // d >= min_steps]
    if ok:
        return max(ok)
    ok = [d for d in divisors if d <= target]
    if ok:
        return max(ok)
    return dim


def _bytes(shape, dtype):
    n = 1
    for d in shape:
        n *= int(d)
    return n * jnp.dtype(dtype).itemsize


def _vmem_limit_bytes(block_bytes):
    """Generation-aware scoped-VMEM limit: ~48 MiB on v7x (64 MiB physical),
    ~96 MiB on v5e/v6e (128 MiB physical)."""
    try:
        cap = int(getattr(pltpu.get_tpu_info(), "vmem_capacity_bytes", 0)) or (64 << 20)
    except Exception:  # pragma: no cover - conservative fallback
        cap = 64 << 20
    hard_cap = (cap * 3) // 4
    need = 2 * int(block_bytes) + (4 << 20)   # double-buffered blocks + headroom
    return int(min(max(need, 32 << 20), hard_cap))


def _compiler_params(dimension_semantics, block_bytes):
    return pltpu.CompilerParams(dimension_semantics=dimension_semantics,
                                vmem_limit_bytes=_vmem_limit_bytes(block_bytes))


def _ln_rows(x, gamma, beta):
    xf = x.astype(jnp.float32)
    mean = jnp.mean(xf, axis=-1, keepdims=True)
    var = jnp.mean(jnp.square(xf - mean), axis=-1, keepdims=True)
    return (xf - mean) * jax.lax.rsqrt(var + LN_EPS) * gamma + beta


# --------------------------------------------------------------------------
# kernel A: pre-attn LayerNorm + fused QKV projection (rows of [B*S, E])
# --------------------------------------------------------------------------
def _ln_qkv_kernel(x_ref, g_ref, be_ref, w_ref, b_ref, q_ref, k_ref, v_ref):
    E = q_ref.shape[-1]
    xn = _ln_rows(x_ref[...], g_ref[...], be_ref[...]).astype(w_ref.dtype)
    y = jnp.dot(xn, w_ref[...], preferred_element_type=jnp.float32) + b_ref[...]
    q_ref[...] = y[:, :E].astype(q_ref.dtype)          # q columns (scaling folded)
    k_ref[...] = y[:, E:2 * E].astype(k_ref.dtype)
    v_ref[...] = y[:, 2 * E:].astype(v_ref.dtype)


def ln_qkv_proj(x2d, p, *, tr_target=512):
    N, E = x2d.shape
    gran = _row_granule(x2d.dtype, MATMUL_DTYPE)
    tR = _pick_tile(N, tr_target, gran, min_steps=2)
    grid = (N // tR,)
    out_shape = jax.ShapeDtypeStruct((N, E), MATMUL_DTYPE)
    out_spec = pl.BlockSpec((tR, E), lambda i: (i, 0))
    blocks = (_bytes((tR, E), x2d.dtype) + 2 * _bytes((1, E), jnp.float32)
              + _bytes((E, 3 * E), p["w_qkv"].dtype) + _bytes((1, 3 * E), jnp.float32)
              + 3 * _bytes((tR, E), MATMUL_DTYPE)
              + 4 * tR * 4 * E)                          # xn + (tR,3E) f32 intermediate
    return pl.pallas_call(
        _ln_qkv_kernel,
        grid=grid,
        in_specs=[pl.BlockSpec((tR, E), lambda i: (i, 0)),
                  pl.BlockSpec((1, E), lambda i: (0, 0)),
                  pl.BlockSpec((1, E), lambda i: (0, 0)),
                  pl.BlockSpec((E, 3 * E), lambda i: (0, 0)),
                  pl.BlockSpec((1, 3 * E), lambda i: (0, 0))],
        out_specs=(out_spec, out_spec, out_spec),
        out_shape=(out_shape, out_shape, out_shape),
        compiler_params=_compiler_params(("parallel",), blocks),
    )(x2d, p["ln1_g"], p["ln1_b"], p["w_qkv"], p["b_qkv"])


# --------------------------------------------------------------------------
# kernel B: attention core (softmax_1) + fused out_proj + residual
#           grid = (batch, query tile)
# --------------------------------------------------------------------------
def _attn_kernel(q_ref, k_ref, v_ref, x_ref, wo_ref, bo_ref, *rest,
                 num_heads, has_bias, has_mask, has_bmul):
    rest = list(rest)
    o_ref = rest.pop()
    bias_ref = rest.pop(0) if has_bias else None
    mask_ref = rest.pop(0) if has_mask else None
    bmul_ref = rest.pop(0) if has_bmul else None

    E = q_ref.shape[2]
    hd = E // num_heads

    qm = q_ref[0]            # (tq, E)  bf16, pre-scaled by head_dim**-0.5
    km = k_ref[0]            # (S,  E)
    vm = v_ref[0]            # (S,  E)
    if has_mask:
        madd = mask_ref[0].astype(jnp.float32)          # (1, S), 0 / -1e9 additive

    outs = []
    for h in range(num_heads):
        sl = slice(h * hd, (h + 1) * hd)
        # QK^T contracting last dims of both operands -> no explicit transpose.
        s = jax.lax.dot_general(qm[:, sl], km[:, sl],
                                dimension_numbers=(((1,), (1,)), ((), ())),
                                preferred_element_type=jnp.float32)   # (tq, S)
        if has_bias:
            s = s + bias_ref[0, h].astype(jnp.float32)
        if has_mask:
            s = s + madd
        # softmax_1 (implicit extra zero logit); clamping the max at 0 is an
        # exact reformulation and prevents exp(-max) overflow.
        m = jnp.maximum(jnp.max(s, axis=-1, keepdims=True), 0.0)
        e = jnp.exp(s - m)
        denom = jnp.exp(-m) + jnp.sum(e, axis=-1, keepdims=True)
        pr = e * pl.reciprocal(denom, approx=True)
        if has_bmul:
            # masked probabilities are exactly 0 already, so masked_fill(bmul, 0)
            # in the module is a no-op here.
            pr = pr * bmul_ref[0, h].astype(jnp.float32)
        outs.append(jnp.dot(pr.astype(vm.dtype), vm[:, sl],
                            preferred_element_type=jnp.float32))      # (tq, hd)

    attn = jnp.concatenate(outs, axis=-1).astype(wo_ref.dtype)        # (tq, E)
    # fused out_proj + residual epilogue
    y = jnp.dot(attn, wo_ref[...], preferred_element_type=jnp.float32) + bo_ref[...]
    o_ref[0] = (y + x_ref[0].astype(jnp.float32)).astype(o_ref.dtype)


def attention_out_proj(q, k, v, x_res, attn_bias, attn_bias_mul, mask_add,
                       p, num_heads, *, tq_target=256):
    B, S, E = q.shape
    H = num_heads
    gran = _row_granule(q.dtype, x_res.dtype,
                        MATMUL_DTYPE if attn_bias is None else attn_bias.dtype)
    tq = _pick_tile(S, tq_target, gran, min_steps=2 if B < 2 else 1)
    grid = (B, S // tq)

    in_specs = [pl.BlockSpec((1, tq, E), lambda b, qi: (b, qi, 0)),   # q
                pl.BlockSpec((1, S, E), lambda b, qi: (b, 0, 0)),     # k
                pl.BlockSpec((1, S, E), lambda b, qi: (b, 0, 0)),     # v
                pl.BlockSpec((1, tq, E), lambda b, qi: (b, qi, 0)),   # residual x
                pl.BlockSpec((E, E), lambda b, qi: (0, 0)),           # wo
                pl.BlockSpec((1, E), lambda b, qi: (0, 0))]           # bo
    args = [q, k, v, x_res, p["wo"], p["bo"]]
    blocks = (_bytes((tq, E), q.dtype) + 2 * _bytes((S, E), q.dtype)
              + _bytes((tq, E), x_res.dtype) + _bytes((E, E), p["wo"].dtype)
              + _bytes((1, E), jnp.float32) + _bytes((tq, E), x_res.dtype))
    if attn_bias is not None:
        in_specs.append(pl.BlockSpec((1, H, tq, S), lambda b, qi: (b, 0, qi, 0)))
        args.append(attn_bias)
        blocks += _bytes((H, tq, S), attn_bias.dtype)
    if mask_add is not None:
        in_specs.append(pl.BlockSpec((1, 1, S), lambda b, qi: (b, 0, 0)))
        args.append(mask_add)
        blocks += _bytes((1, S), jnp.float32)
    if attn_bias_mul is not None:
        in_specs.append(pl.BlockSpec((1, H, tq, S), lambda b, qi: (b, 0, qi, 0)))
        args.append(attn_bias_mul)
        blocks += _bytes((H, tq, S), attn_bias_mul.dtype)
    # in-kernel intermediates: (tq,S) s/e/p f32 + (tq,E) attn/epilogue f32
    blocks += 3 * tq * S * 4 + 3 * tq * E * 4

    kernel = functools.partial(
        _attn_kernel, num_heads=H,
        has_bias=attn_bias is not None, has_mask=mask_add is not None,
        has_bmul=attn_bias_mul is not None)

    return pl.pallas_call(
        kernel, grid=grid,
        in_specs=in_specs,
        out_specs=pl.BlockSpec((1, tq, E), lambda b, qi: (b, qi, 0)),
        out_shape=jax.ShapeDtypeStruct((B, S, E), x_res.dtype),
        compiler_params=_compiler_params(("parallel", "parallel"), blocks),
    )(*args)


# --------------------------------------------------------------------------
# kernel C: pre-FFN LayerNorm + fc1 + GELU   (weight-column tile = outer axis)
# --------------------------------------------------------------------------
def _ln_fc1_gelu_kernel(x_ref, g_ref, be_ref, w_ref, b_ref, o_ref):
    xn = _ln_rows(x_ref[...], g_ref[...], be_ref[...]).astype(w_ref.dtype)
    y = jnp.dot(xn, w_ref[...], preferred_element_type=jnp.float32) + b_ref[...]
    # TODO(synk): nn.GELU() is the exact erf variant; the tanh approximation is
    # used here for the EUP path (max abs deviation ~3e-3, within tolerance).
    o_ref[...] = jax.nn.gelu(y, approximate=True).astype(o_ref.dtype)


def ln_fc1_gelu(x2d, p, *, tr_target=512, tc_target=512):
    N, E = x2d.shape
    F = p["w1"].shape[1]
    tR = _pick_tile(N, tr_target, _row_granule(x2d.dtype, MATMUL_DTYPE))
    tF = _pick_tile(F, tc_target, 128)
    grid = (F // tF, N // tR)   # weight tile outer -> W1 column tile DMA'd once
    blocks = (_bytes((tR, E), x2d.dtype) + 2 * _bytes((1, E), jnp.float32)
              + _bytes((E, tF), p["w1"].dtype) + _bytes((1, tF), jnp.float32)
              + _bytes((tR, tF), MATMUL_DTYPE)
              + 2 * tR * E + 4 * tR * tF)                # xn bf16 + y f32
    return pl.pallas_call(
        _ln_fc1_gelu_kernel,
        grid=grid,
        in_specs=[pl.BlockSpec((tR, E), lambda j, i: (i, 0)),
                  pl.BlockSpec((1, E), lambda j, i: (0, 0)),
                  pl.BlockSpec((1, E), lambda j, i: (0, 0)),
                  pl.BlockSpec((E, tF), lambda j, i: (0, j)),
                  pl.BlockSpec((1, tF), lambda j, i: (0, j))],
        out_specs=pl.BlockSpec((tR, tF), lambda j, i: (i, j)),
        out_shape=jax.ShapeDtypeStruct((N, F), MATMUL_DTYPE),
        compiler_params=_compiler_params(("parallel", "parallel"), blocks),
    )(x2d, p["ln2_g"], p["ln2_b"], p["w1"], p["b1"])


# --------------------------------------------------------------------------
# kernel D: fc2 + residual                  (weight-column tile = outer axis)
# --------------------------------------------------------------------------
def _fc2_residual_kernel(h_ref, w_ref, b_ref, r_ref, o_ref):
    y = jnp.dot(h_ref[...].astype(w_ref.dtype), w_ref[...],
                preferred_element_type=jnp.float32) + b_ref[...]
    o_ref[...] = (y + r_ref[...].astype(jnp.float32)).astype(o_ref.dtype)


def fc2_residual(h2d, resid2d, p, *, tr_target=512, tc_target=512):
    N, F = h2d.shape
    E = p["w2"].shape[1]
    tR = _pick_tile(N, tr_target, _row_granule(h2d.dtype, resid2d.dtype))
    tE = _pick_tile(E, tc_target, 128)
    grid = (E // tE, N // tR)
    blocks = (_bytes((tR, F), h2d.dtype) + _bytes((F, tE), p["w2"].dtype)
              + _bytes((1, tE), jnp.float32) + 2 * _bytes((tR, tE), resid2d.dtype)
              + 4 * tR * tE)
    return pl.pallas_call(
        _fc2_residual_kernel,
        grid=grid,
        in_specs=[pl.BlockSpec((tR, F), lambda j, i: (i, 0)),
                  pl.BlockSpec((F, tE), lambda j, i: (0, j)),
                  pl.BlockSpec((1, tE), lambda j, i: (0, j)),
                  pl.BlockSpec((tR, tE), lambda j, i: (i, j))],
        out_specs=pl.BlockSpec((tR, tE), lambda j, i: (i, j)),
        out_shape=jax.ShapeDtypeStruct((N, E), resid2d.dtype),
        compiler_params=_compiler_params(("parallel", "parallel"), blocks),
    )(h2d, p["w2"], p["b2"], resid2d)


# --------------------------------------------------------------------------
# layer forward
# --------------------------------------------------------------------------
def encoder_layer_forward(params, x, attn_bias, attn_bias_mul,
                          key_padding_mask, num_heads):
    S, B, E = x.shape

    # single XLA transpose to batch-major (negligible vs. bias traffic)
    xb = jnp.transpose(x, (1, 0, 2))                    # [B, S, E]
    x2d = xb.reshape(B * S, E)

    # ---- self-attention block: LN1 -> fused QKV -> attention + out_proj + residual
    q2d, k2d, v2d = ln_qkv_proj(x2d, params)            # each [B*S, E] bf16
    q = q2d.reshape(B, S, E)
    k = k2d.reshape(B, S, E)
    v = v2d.reshape(B, S, E)

    bias = None if attn_bias is None else attn_bias.astype(MATMUL_DTYPE)
    bmul = None if attn_bias_mul is None else attn_bias_mul.astype(MATMUL_DTYPE)
    mask_add = (None if key_padding_mask is None else
                (key_padding_mask.astype(jnp.float32) * NEG_INF).reshape(B, 1, S))

    y1 = attention_out_proj(q, k, v, xb, bias, bmul, mask_add,
                            params, num_heads)          # [B, S, E] (residual added)

    # ---- feed-forward block: LN2 -> fc1 + GELU -> fc2 + residual
    y1_2d = y1.reshape(B * S, E)
    hg = ln_fc1_gelu(y1_2d, params)                     # [B*S, F] bf16
    y2 = fc2_residual(hg, y1_2d, params)                # [B*S, E]
    return jnp.transpose(y2.reshape(B, S, E), (1, 0, 2))   # back to [S, B, E]


# --------------------------------------------------------------------------
# one-time parameter preparation (transpose, head un-interleave, bf16 cast,
# attention scaling folded into Wq / bq)
# --------------------------------------------------------------------------
def prepare_params(raw, num_heads):
    E = raw["ln1_g"].shape[0]
    H = num_heads
    hd = E // H
    scaling = hd ** (-0.5)
    # in_proj output channel c -> (head = c // (3hd), slot, r); un-interleave into
    # contiguous head-major q / k / v column blocks of one fused (E, 3E) weight.
    w_in_t = raw["in_proj_w"].T.reshape(E, H, 3, hd)
    b_in = raw["in_proj_b"].reshape(H, 3, hd)
    wq = w_in_t[:, :, 0, :].reshape(E, E) * scaling
    wk = w_in_t[:, :, 1, :].reshape(E, E)
    wv = w_in_t[:, :, 2, :].reshape(E, E)
    bq = b_in[:, 0, :].reshape(E) * scaling
    bk = b_in[:, 1, :].reshape(E)
    bv = b_in[:, 2, :].reshape(E)
    return dict(
        ln1_g=raw["ln1_g"].reshape(1, E), ln1_b=raw["ln1_b"].reshape(1, E),
        ln2_g=raw["ln2_g"].reshape(1, E), ln2_b=raw["ln2_b"].reshape(1, E),
        w_qkv=jnp.concatenate([wq, wk, wv], axis=1).astype(MATMUL_DTYPE),
        b_qkv=jnp.concatenate([bq, bk, bv]).reshape(1, 3 * E).astype(jnp.float32),
        wo=raw["out_proj_w"].T.astype(MATMUL_DTYPE),
        bo=raw["out_proj_b"].reshape(1, E).astype(jnp.float32),
        w1=raw["fc1_w"].T.astype(MATMUL_DTYPE),
        b1=raw["fc1_b"].reshape(1, -1).astype(jnp.float32),
        w2=raw["fc2_w"].T.astype(MATMUL_DTYPE),
        b2=raw["fc2_b"].reshape(1, E).astype(jnp.float32),
    )


# --------------------------------------------------------------------------
# pure-JAX f32 reference (mirrors the PyTorch module)
# --------------------------------------------------------------------------
def reference_forward(raw, x, attn_bias, attn_bias_mul, key_padding_mask, H):
    S, B, E = x.shape
    hd = E // H
    scaling = hd ** (-0.5)

    def ln(v, g, b):
        m = jnp.mean(v, -1, keepdims=True)
        var = jnp.mean(jnp.square(v - m), -1, keepdims=True)
        return (v - m) / jnp.sqrt(var + LN_EPS) * g + b

    def lin(v, w, b):
        return v @ w.T + b

    identity = x
    h = ln(x, raw["ln1_g"], raw["ln1_b"])
    proj = lin(h, raw["in_proj_w"], raw["in_proj_b"])
    proj = proj.reshape(S, B * H, 3 * hd).transpose(1, 0, 2)
    q, k, v = jnp.split(proj, 3, axis=-1)
    q = q * scaling
    w_ = jnp.einsum("bqd,bkd->bqk", q, k)
    if attn_bias is not None:
        w_ = w_ + attn_bias.reshape(B * H, S, S)
    if key_padding_mask is not None:
        w_ = w_.reshape(B, H, S, S)
        w_ = jnp.where(key_padding_mask[:, None, None, :], NEG_INF, w_)
        w_ = w_.reshape(B * H, S, S)
    mx = jnp.max(w_, -1, keepdims=True)
    e = jnp.exp(w_ - mx)
    p = e / (jnp.exp(-mx) + jnp.sum(e, -1, keepdims=True))
    if attn_bias_mul is not None:
        abm = attn_bias_mul
        if key_padding_mask is not None:
            abm = jnp.where(key_padding_mask[:, None, None, :], 0.0, abm)
        p = p * abm.reshape(B * H, S, S)
    attn = jnp.einsum("bqk,bkd->bqd", p, v)
    attn = attn.transpose(1, 0, 2).reshape(S, B, E)
    attn = lin(attn, raw["out_proj_w"], raw["out_proj_b"])
    x = identity + attn
    identity = x
    h = ln(x, raw["ln2_g"], raw["ln2_b"])
    h = jax.nn.gelu(lin(h, raw["fc1_w"], raw["fc1_b"]), approximate=False)
    h = lin(h, raw["fc2_w"], raw["fc2_b"])
    return identity + h


# --------------------------------------------------------------------------
# deterministic parameter init (shapes from the module's __init__)
# --------------------------------------------------------------------------
def init_params(key, E, F):
    ks = jax.random.split(key, 6)

    def xavier(k, shape):
        fan_out, fan_in = shape
        lim = math.sqrt(6.0 / (fan_in + fan_out))
        return jax.random.uniform(k, shape, jnp.float32, -lim, lim)

    return dict(
        ln1_g=jnp.ones((E,), jnp.float32), ln1_b=jnp.zeros((E,), jnp.float32),
        ln2_g=jnp.ones((E,), jnp.float32), ln2_b=jnp.zeros((E,), jnp.float32),
        in_proj_w=xavier(ks[0], (3 * E, E)),
        in_proj_b=jnp.zeros((3 * E,), jnp.float32),
        out_proj_w=xavier(ks[1], (E, E)),
        out_proj_b=jnp.zeros((E,), jnp.float32),
        fc1_w=xavier(ks[2], (F, E)),
        fc1_b=jax.random.uniform(ks[3], (F,), jnp.float32, -0.05, 0.05),
        fc2_w=xavier(ks[4], (E, F)),
        fc2_b=jax.random.uniform(ks[5], (E,), jnp.float32, -0.05, 0.05),
    )


if __name__ == "__main__":
    S, B, E, H, F = 8, 2, 32, 4, 64   # seq, batch, embed, heads, ffn
    key = jax.random.PRNGKey(0)
    kx, kb, km, kp = jax.random.split(key, 4)

    x = jax.random.normal(kx, (S, B, E), jnp.float32)
    attn_bias = 0.1 * jax.random.normal(kb, (B, H, S, S), jnp.float32)
    attn_bias_mul = jax.nn.sigmoid(jax.random.normal(km, (B, H, S, S), jnp.float32))
    key_padding_mask = jnp.zeros((B, S), jnp.bool_).at[1, -2:].set(True)

    raw = init_params(kp, E, F)
    params = prepare_params(raw, H)

    out = jax.block_until_ready(
        encoder_layer_forward(params, x, attn_bias, attn_bias_mul,
                              key_padding_mask, H))
    ref = reference_forward(raw, x, attn_bias, attn_bias_mul,
                            key_padding_mask, H)
    assert out.shape == (S, B, E)
    err = float(jnp.max(jnp.abs(out - ref)))
    # bf16 matmuls / bf16 bias / tanh-GELU vs the f32 erf reference -> loose tol
    assert jnp.allclose(out, ref, atol=5e-2, rtol=5e-2), \
        f"mismatch vs reference (max abs err {err:.3e})"

    # also exercise the optional-input (None) code paths
    out2 = jax.block_until_ready(
        encoder_layer_forward(params, x, None, None, None, H))
    ref2 = reference_forward(raw, x, None, None, None, H)
    err2 = float(jnp.max(jnp.abs(out2 - ref2)))
    assert jnp.allclose(out2, ref2, atol=5e-2, rtol=5e-2), \
        f"mismatch (None path, max abs err {err2:.3e})"

    print("KERNEL_OK")
</pallas_src>

<mosaic_0001>
module attributes {stable_mosaic.version = 11 : i64} {
  func.func @_ln_qkv_kernel(%arg0: i32, %arg1: memref<16x32xf32, #tpu.memory_space<vmem>>, %arg2: memref<1x32xf32, #tpu.memory_space<vmem>>, %arg3: memref<1x32xf32, #tpu.memory_space<vmem>>, %arg4: memref<32x96xbf16, #tpu.memory_space<vmem>>, %arg5: memref<1x96xf32, #tpu.memory_space<vmem>>, %arg6: memref<16x32xbf16, #tpu.memory_space<vmem>>, %arg7: memref<16x32xbf16, #tpu.memory_space<vmem>>, %arg8: memref<16x32xbf16, #tpu.memory_space<vmem>>) attributes {dimension_semantics = [#tpu.dimension_semantics<parallel>], iteration_bounds = array<i64: 1>, scalar_prefetch = 0 : i64, scratch_operands = 0 : i64, tpu.core_type = #tpu.core_type<tc>, window_params = [{transform_indices = @transform_0, window_bounds = array<i64: 16, 32>}, {pipeline_mode = #tpu.pipeline_mode<synchronous>, transform_indices = @transform_1, window_bounds = array<i64: 1, 32>}, {pipeline_mode = #tpu.pipeline_mode<synchronous>, transform_indices = @transform_2, window_bounds = array<i64: 1, 32>}, {pipeline_mode = #tpu.pipeline_mode<synchronous>, transform_indices = @transform_3, window_bounds = array<i64: 32, 96>}, {pipeline_mode = #tpu.pipeline_mode<synchronous>, transform_indices = @transform_4, window_bounds = array<i64: 1, 96>}, {transform_indices = @transform_5, window_bounds = array<i64: 16, 32>}, {transform_indices = @transform_6, window_bounds = array<i64: 16, 32>}, {transform_indices = @transform_7, window_bounds = array<i64: 16, 32>}]} {
    %c0 = arith.constant 0 : index
    %c0_0 = arith.constant 0 : index
    %0 = vector.load %arg1[%c0, %c0_0] : memref<16x32xf32, #tpu.memory_space<vmem>>, vector<16x32xf32>
    %c0_1 = arith.constant 0 : index
    %c0_2 = arith.constant 0 : index
    %1 = vector.load %arg2[%c0_1, %c0_2] : memref<1x32xf32, #tpu.memory_space<vmem>>, vector<1x32xf32>
    %c0_3 = arith.constant 0 : index
    %c0_4 = arith.constant 0 : index
    %2 = vector.load %arg3[%c0_3, %c0_4] : memref<1x32xf32, #tpu.memory_space<vmem>>, vector<1x32xf32>
    %cst = arith.constant dense<0.000000e+00> : vector<16xf32>
    %3 = vector.multi_reduction <add>, %0, %cst [1] : vector<16x32xf32> to vector<16xf32>
    %4 = vector.shape_cast %3 : vector<16xf32> to vector<16x1xf32>
    %cst_5 = arith.constant 3.200000e+01 : f32
    %5 = vector.broadcast %cst_5 : f32 to vector<16x1xf32>
    %6 = arith.divf %4, %5 : vector<16x1xf32>
    %7 = vector.broadcast %6 : vector<16x1xf32> to vector<16x32xf32>
    %8 = arith.subf %0, %7 : vector<16x32xf32>
    %9 = arith.mulf %8, %8 : vector<16x32xf32>
    %cst_6 = arith.constant dense<0.000000e+00> : vector<16xf32>
    %10 = vector.multi_reduction <add>, %9, %cst_6 [1] : vector<16x32xf32> to vector<16xf32>
    %11 = vector.shape_cast %10 : vector<16xf32> to vector<16x1xf32>
    %cst_7 = arith.constant 3.200000e+01 : f32
    %12 = vector.broadcast %cst_7 : f32 to vector<16x1xf32>
    %13 = arith.divf %11, %12 : vector<16x1xf32>
    %14 = vector.broadcast %6 : vector<16x1xf32> to vector<16x32xf32>
    %15 = arith.subf %0, %14 : vector<16x32xf32>
    %cst_8 = arith.constant 9.99999974E-6 : f32
    %16 = vector.broadcast %cst_8 : f32 to vector<16x1xf32>
    %17 = arith.addf %13, %16 : vector<16x1xf32>
    %18 = math.rsqrt %17 : vector<16x1xf32>
    %19 = vector.broadcast %18 : vector<16x1xf32> to vector<16x32xf32>
    %20 = arith.mulf %15, %19 : vector<16x32xf32>
    %21 = vector.broadcast %1 : vector<1x32xf32> to vector<16x32xf32>
    %22 = arith.mulf %20, %21 : vector<16x32xf32>
    %23 = vector.broadcast %2 : vector<1x32xf32> to vector<16x32xf32>
    %24 = arith.addf %22, %23 : vector<16x32xf32>
    %25 = arith.truncf %24 : vector<16x32xf32> to vector<16x32xbf16>
    %c0_9 = arith.constant 0 : index
    %c0_10 = arith.constant 0 : index
    %26 = vector.load %arg4[%c0_9, %c0_10] : memref<32x96xbf16, #tpu.memory_space<vmem>>, vector<32x96xbf16>
    %cst_11 = arith.constant dense<0.000000e+00> : vector<16x96xf32>
    %27 = tpu.matmul %25, %26, %cst_11 {dimension_numbers = #tpu.dot_dimension_numbers<[1], [0], [0], [1], [0, 0, 1, 1], [], []>} : vector<16x32xbf16>, vector<32x96xbf16>, vector<16x96xf32> -> vector<16x96xf32>
    %c0_12 = arith.constant 0 : index
    %c0_13 = arith.constant 0 : index
    %28 = vector.load %arg5[%c0_12, %c0_13] : memref<1x96xf32, #tpu.memory_space<vmem>>, vector<1x96xf32>
    %29 = vector.broadcast %28 : vector<1x96xf32> to vector<16x96xf32>
    %30 = arith.addf %27, %29 : vector<16x96xf32>
    %31 = vector.extract_strided_slice %30 {offsets = [0, 0], sizes = [16, 32], strides = [1, 1]} : vector<16x96xf32> to vector<16x32xf32>
    %32 = arith.truncf %31 : vector<16x32xf32> to vector<16x32xbf16>
    %c0_14 = arith.constant 0 : index
    %c0_15 = arith.constant 0 : index
    %33 = vector.load %arg6[%c0_14, %c0_15] : memref<16x32xbf16, #tpu.memory_space<vmem>>, vector<16x32xbf16>
    tpu.vector_store %arg6[%c0_14, %c0_15], %32 {strides = array<i32>} : memref<16x32xbf16, #tpu.memory_space<vmem>>, vector<16x32xbf16>,
    %34 = vector.extract_strided_slice %30 {offsets = [0, 32], sizes = [16, 32], strides = [1, 1]} : vector<16x96xf32> to vector<16x32xf32>
    %35 = arith.truncf %34 : vector<16x32xf32> to vector<16x32xbf16>
    %c0_16 = arith.constant 0 : index
    %c0_17 = arith.constant 0 : index
    %36 = vector.load %arg7[%c0_16, %c0_17] : memref<16x32xbf16, #tpu.memory_space<vmem>>, vector<16x32xbf16>
    tpu.vector_store %arg7[%c0_16, %c0_17], %35 {strides = array<i32>} : memref<16x32xbf16, #tpu.memory_space<vmem>>, vector<16x32xbf16>,
    %37 = vector.extract_strided_slice %30 {offsets = [0, 64], sizes = [16, 32], strides = [1, 1]} : vector<16x96xf32> to vector<16x32xf32>
    %38 = arith.truncf %37 : vector<16x32xf32> to vector<16x32xbf16>
    %c0_18 = arith.constant 0 : index
    %c0_19 = arith.constant 0 : index
    %39 = vector.load %arg8[%c0_18, %c0_19] : memref<16x32xbf16, #tpu.memory_space<vmem>>, vector<16x32xbf16>
    tpu.vector_store %arg8[%c0_18, %c0_19], %38 {strides = array<i32>} : memref<16x32xbf16, #tpu.memory_space<vmem>>, vector<16x32xbf16>,
    return
  }
  func.func @transform_0(%arg0: i32) -> (i32, i32) {
    %c0_i32 = arith.constant 0 : i32
    %c0_i32_0 = arith.constant 0 : i32
    return %arg0, %c0_i32 : i32, i32
  }
  func.func @transform_1(%arg0: i32) -> (i32, i32) {
    %c0_i32 = arith.constant 0 : i32
    %c0_i32_0 = arith.constant 0 : i32
    %c0_i32_1 = arith.constant 0 : i32
    return %c0_i32, %c0_i32_0 : i32, i32
  }
  func.func @transform_2(%arg0: i32) -> (i32, i32) {
    %c0_i32 = arith.constant 0 : i32
    %c0_i32_0 = arith.constant 0 : i32
    %c0_i32_1 = arith.constant 0 : i32
    return %c0_i32, %c0_i32_0 : i32, i32
  }
  func.func @transform_3(%arg0: i32) -> (i32, i32) {
    %c0_i32 = arith.constant 0 : i32
    %c0_i32_0 = arith.constant 0 : i32
    %c0_i32_1 = arith.constant 0 : i32
    return %c0_i32, %c0_i32_0 : i32, i32
  }
  func.func @transform_4(%arg0: i32) -> (i32, i32) {
    %c0_i32 = arith.constant 0 : i32
    %c0_i32_0 = arith.constant 0 : i32
    %c0_i32_1 = arith.constant 0 : i32
    return %c0_i32, %c0_i32_0 : i32, i32
  }
  func.func @transform_5(%arg0: i32) -> (i32, i32) {
    %c0_i32 = arith.constant 0 : i32
    %c0_i32_0 = arith.constant 0 : i32
    return %arg0, %c0_i32 : i32, i32
  }
  func.func @transform_6(%arg0: i32) -> (i32, i32) {
    %c0_i32 = arith.constant 0 : i32
    %c0_i32_0 = arith.constant 0 : i32
    return %arg0, %c0_i32 : i32, i32
  }
  func.func @transform_7(%arg0: i32) -> (i32, i32) {
    %c0_i32 = arith.constant 0 : i32
    %c0_i32_0 = arith.constant 0 : i32
    return %arg0, %c0_i32 : i32, i32
  }
}

</mosaic_0001>

<bundles_post_ra>
// kernel: tpu_custom_call.1
= control target key start
LH: loop header
LB: loop body
LE: loop exit
PB: predicated region body
PF: predicated region fallthrough
CT: control target
= control target key end

     0   :  { %13 = vsyncpa [#allocation3], 0  ;;  %s549_s0 = inlined_call_operand.hbm [shape: f32[16,32], index: 0, kind: input, shape index: {}]   ;;  %s550_s1 = inlined_call_operand.vmem [shape: f32[1,32], index: 1, kind: input, shape index: {}]   ;;  %s551_s2 = inlined_call_operand.vmem [shape: f32[1,32], index: 2, kind: input, shape index: {}]   ;;  %s552_s3 = inlined_call_operand.hbm [shape: bf16[32,96], index: 3, kind: input, shape index: {}]   ;;  %s553_s4 = inlined_call_operand.vmem [shape: f32[1,96], index: 4, kind: input, shape index: {}]   ;;  %s554_s5 = inlined_call_operand.hbm [shape: bf16[16,32], index: 5, kind: output, shape index: {0}]   ;;  %s555_s6 = inlined_call_operand.hbm [shape: bf16[16,32], index: 6, kind: output, shape index: {1}]   ;;  %s556_s7 = inlined_call_operand.hbm [shape: bf16[16,32], index: 7, kind: output, shape index: {2}]  }
   0x1   :  { %14 = vsyncpa [#allocation6], 0 }
   0x2   :  { %15 = vsyncpa [#allocation4], 0 }
   0x3   :  { %16 = vsyncpa [#allocation9], 0  ;;  %s403_s24 = smov [#allocation2]   ;;  %s285_s28 = scalar_lea.hbm %s549_s0, 256 }
   0x4   :  { %s22_s25 = sshll.u32 %s403_s24, 4  ;;  %p286_p0 = scmp.ne.s32.totalorder %s549_s0, %s285_s28  ;;  %s23_s25 = int_to_ptr.vmem [resolvable:$true] %s22_s25 }
   0x5   :  { %p289_p1 = scmp.lt.u32.totalorder %s285_s28, %s549_s0 }
   0x7   :  { %p291_p2 = pnand %p289_p1, %p286_p0 }
   0x9   :  { %294 = shalt.err (!%p291_p2)
}
   0xa   :  { %s295_s10 = scalar_lea.vmem %s23_s25, 256  ;;  %p300_p4 = scmp.lt.s32.totalorder %s23_s25, %s23_s25 }
   0xb   :  { %p296_p3 = scmp.ne.s32.totalorder %s23_s25, %s295_s10  ;;  %p301_p5 = scmp.lt.s32.totalorder %s295_s10, %s295_s10 }
   0xd   :  { %p302_p6 = por %p301_p5, %p300_p4 }
   0xf   :  { %p303_p7 = pnand %p302_p6, %p296_p3 }
  0x11   :  { %306 = shalt.err (!%p303_p7)
}
  0x12   :  { %s404_s11 = smov 128   ;;  %s405_s12 = smov 8  }
  0x13   :  { %28 = dma.hbm_to_vmem [thread:$0]  %s549_s0, 256, %s23_s25, [#allocation3], %s404_s11, %s404_s11, %s405_s12  }
  0x14   :  { %s406_s15 = smov [#allocation5]   ;;  %s307_s19 = scalar_lea.hbm %s552_s3, 256 }
  0x15   :  { %s38_s16 = sshll.u32 %s406_s15, 4  ;;  %p308_p8 = scmp.ne.s32.totalorder %s552_s3, %s307_s19  ;;  %s39_s16 = int_to_ptr.vmem [resolvable:$true] %s38_s16 }
  0x16   :  { %p311_p9 = scmp.lt.u32.totalorder %s307_s19, %s552_s3 }
  0x18   :  { %p313_p10 = pnand %p311_p9, %p308_p8 }
  0x1a   :  { %316 = shalt.err (!%p313_p10)
}
  0x1b   :  { %s317_s24 = scalar_lea.vmem %s39_s16, 256  ;;  %p322_p12 = scmp.lt.s32.totalorder %s39_s16, %s39_s16 }
  0x1c   :  { %p318_p11 = scmp.ne.s32.totalorder %s39_s16, %s317_s24  ;;  %p323_p13 = scmp.lt.s32.totalorder %s317_s24, %s317_s24 }
  0x1e   :  { %p324_p0 = por %p323_p13, %p322_p12 }
  0x20   :  { %p325_p1 = pnand %p324_p0, %p318_p11 }
  0x22   :  { %328 = shalt.err (!%p325_p1)
}
  0x23   :  { %s407_s0 = smov 64   ;;  %s408_s25 = smov 4  }
  0x24   :  { %44 = dma.hbm_to_vmem [thread:$0]  %s552_s3, 256, %s39_s16, [#allocation6], %s407_s0, %s407_s0, %s408_s25  }
  0x25   :  { %395 = dma.done.wait [#allocation3], 256  }
  0x26   :  { %396 = vsyncadd [#allocation3], 4294967040 }
  0x27   :  { %397 = dma.done.wait [#allocation6], 256  }
  0x28   :  { %398 = vsyncadd [#allocation6], 4294967040  ;;  %vm58_vm0 = vcmask 261120   ;;  %v54_v0 = vld [vmem:[#allocation2] sm:$0xff]  ;;  %v55_v1 = vld [vmem:[#allocation2 + $0x8] sm:$0xff]  ;;  %v409_v15 = vmov 0.0  }
  0x29   :  { %v59_v2 = vsel %vm58_vm0, %v54_v0, 0.0  ;;  %v62_v3 = vsel %vm58_vm0, %v55_v1, 0.0  ;;  %v279_v14 = vld [vmem:[#allocation5] sm:$0xff]   ;;  %259 = vmatprep.subr.bf16.mxu0 %v409_v15  ;;  %v280_v16 = vld [vmem:[#allocation5 + $0x8] sm:$0xff]   ;;  %vm410_vm1 = vmmov 0   ;;  %vm178_vm2 = vcmask 257024  }
  0x2a   :  { %60 = vadd.xlane.f32.xlu0 %v59_v2  ;;  %260 = vmatpush3.bf16.msra.mxu0 %v279_v14  ;;  %v246_v25 = vld [vmem:[%s550_s1] ss:$0 sm:$0xff]  ;;  %s411_s1 = smov [#allocation7]  }
  0x2b   :  { %263 = vmatprep.mubr.msk.bf16.mxu0 %vm410_vm1, %v409_v15  ;;  %261 = vmatprep.subr.bf16.mxu0 %v409_v15  ;;  %v247_v29 = vld [vmem:[%s551_s2] ss:$0 sm:$0xff]  ;;  %s202_s10 = sshll.u32 %s411_s1, 4  ;;  %s412_s2 = smov 96   ;;  %s203_s10 = int_to_ptr.vmem [resolvable:$true] %s202_s10 }
  0x2c   :  { %v248_v34 = vld [vmem:[%s553_s4] ss:$0 sm:$0xff]  ;;  %s329_s4 = scalar_lea.vmem %s203_s10, 128  ;;  %p334_p3 = scmp.lt.s32.totalorder %s203_s10, %s203_s10 }
  0x2d   :  { %p330_p2 = scmp.ne.s32.totalorder %s203_s10, %s329_s4  ;;  %p335_p4 = scmp.lt.s32.totalorder %s329_s4, %s329_s4 }
  0x2e   :  { %63 = vadd.xlane.f32.xlu0 %v62_v3  ;;  %262 = vmatpush3.bf16.msra.mxu0 %v280_v16 }
  0x2f   :  { %p336_p5 = por %p335_p4, %p334_p3 }
  0x31   :  { %p337_p6 = pnand %p336_p5, %p330_p2 }
  0xb7   :  { %v61_v4 = vpop.xlane.xlu0 %60 }
  0xb8   :  { %v66_v5 = vmul.f32 0.03125, %v61_v4 }
  0xba   :  { %v68_v6 = vsub.f32 %v54_v0, %v66_v5 }
  0xbb   :  { %v64_v7 = vpop.xlane.xlu0 %63 }
  0xbc   :  { %v67_v8 = vmul.f32 0.03125, %v64_v7  ;;  %v70_v9 = vmul.f32 %v68_v6, %v68_v6 }
  0xbe   :  { %v69_v10 = vsub.f32 %v55_v1, %v67_v8  ;;  %v72_v11 = vsel %vm58_vm0, %v70_v9, 0.0 }
  0xbf   :  { %73 = vadd.xlane.f32.xlu1 %v72_v11 }
  0xc0   :  { %v71_v12 = vmul.f32 %v69_v10, %v69_v10 }
  0xc2   :  { %v75_v13 = vsel %vm58_vm0, %v71_v12, 0.0 }
  0xc3   :  { %76 = vadd.xlane.f32.xlu1 %v75_v13 }
 0x14c   :  { %v74_v17 = vpop.xlane.xlu1 %73 }
 0x14d   :  { %v78_v18 = vmul.f32 0.03125, %v74_v17 }
 0x14f   :  { %v80_v19 = vadd.f32 1e-05, %v78_v18 }
 0x150   :  { %v77_v20 = vpop.xlane.xlu1 %76 }
 0x151   :  { %281 = vrsqrt.f32 %v80_v19  ;;  %v79_v21 = vmul.f32 0.03125, %v77_v20 }
 0x153   :  { %v81_v22 = vadd.f32 1e-05, %v79_v21 }
 0x155   :  { %283 = vrsqrt.f32 %v81_v22 }
 0x15b   :  { %v282_v23 = vpop.eup %281 }
 0x15c   :  { %v84_v24 = vmul.f32 %v282_v23, %v68_v6 }
 0x15e   :  { %v92_v28 = vmul.f32 %v246_v25, %v84_v24 }
 0x15f   :  { %v284_v26 = vpop.eup %283 }
 0x160   :  { %v85_v27 = vmul.f32 %v284_v26, %v69_v10  ;;  %v100_v31 = vadd.f32 %v247_v29, %v92_v28 }
 0x162   :  { %v93_v30 = vmul.f32 %v246_v25, %v85_v27 }
 0x164   :  { %v101_v32 = vadd.f32 %v247_v29, %v93_v30 }
 0x166   :  { %v102_v33 = vpack.c.bf16 %v101_v32, %v100_v31 }
 0x168   :  { %264 = vmatmul.mubr.msk.bf16.vlgmr.msra.gmra.mrb[0].mxu0 %vm58_vm0, %v102_v33 }
 0x23b   :  { %v163_v35 = vpop.f32.mrb[0].mxu0 }
 0x23c   :  { %v164_v36 = vadd.f32 %v248_v34, %v163_v35  ;;  %v265_v37 = vpop.f32.mrb[1].mxu0 }
 0x23d   :  { %v166_v38 = vpop.f32.mrb[2].mxu0 }
 0x23e   :  { %v254_v39 = vpack.c.bf16 %v164_v36, %v164_v36  ;;  %v167_v40 = vadd.f32 %v248_v34, %v166_v38  ;;  %v266_v41 = vpop.f32.mrb[3].mxu0 }
 0x240   :  { %v255_v42 = vpack.c.bf16 %v167_v40, %v167_v40  ;;  %189 = vrot.lane.b32.xlu1 %v254_v39, %s407_s0  ;;  %181 = vrot.lane.b32.xlu0 %v254_v39, %s412_s2  ;;  %179 = vst.msk [vmem:[#allocation7] sm:$0xf] %vm178_vm2, %v254_v39 }
 0x242   :  { %180 = vst.msk [vmem:[#allocation7 + $0x4] sm:$0xf] %vm178_vm2, %v255_v42 }
 0x243   :  { %340 = shalt.err (!%p337_p6)
}
 0x244   :  { %s341_s13 = scalar_lea.hbm %s554_s5, 128 }
 0x245   :  { %p342_p7 = scmp.ne.s32.totalorder %s554_s5, %s341_s13  ;;  %p345_p8 = scmp.lt.u32.totalorder %s341_s13, %s554_s5 }
 0x247   :  { %p347_p9 = pnand %p345_p8, %p342_p7 }
 0x249   :  { %350 = shalt.err (!%p347_p9)
}
 0x24a   :  { %208 = dma.vmem_to_hbm [thread:$0]  %s203_s10, 128, %s554_s5, [#allocation4], %s407_s0, %s407_s0, %s408_s25  }
 0x24b   :  { %183 = vrot.lane.b32.xlu1 %v255_v42, %s412_s2  ;;  %s413_s20 = smov [#allocation8]   ;;  %s414_s22 = smov [#allocation10]  }
 0x24c   :  { %s214_s21 = sshll.u32 %s413_s20, 4  ;;  %s226_s23 = sshll.u32 %s414_s22, 4  ;;  %s215_s21 = int_to_ptr.vmem [resolvable:$true] %s214_s21  ;;  %s227_s23 = int_to_ptr.vmem [resolvable:$true] %s226_s23 }
 0x24d   :  { %s351_s24 = scalar_lea.vmem %s215_s21, 128  ;;  %p356_p11 = scmp.lt.s32.totalorder %s215_s21, %s215_s21 }
 0x24e   :  { %p352_p10 = scmp.ne.s32.totalorder %s215_s21, %s351_s24  ;;  %p357_p12 = scmp.lt.s32.totalorder %s351_s24, %s351_s24 }
 0x24f   :  { %191 = vrot.lane.b32.xlu1 %v255_v42, %s407_s0 }
 0x250   :  { %p358_p13 = por %p357_p12, %p356_p11 }
 0x252   :  { %p359_p0 = pnand %p358_p13, %p352_p10 }
 0x2b2   :  { %v190_v43 = vpop.permute.xlu1 %189  ;;  %v182_v44 = vpop.permute.xlu0 %181 }
 0x2b3   :  { %195 = vst.msk [vmem:[#allocation10] sm:$0xf] %vm178_vm2, %v190_v43  ;;  %187 = vst.msk [vmem:[#allocation8] sm:$0xf] %vm178_vm2, %v182_v44 }
 0x2bd   :  { %v184_v45 = vpop.permute.xlu1 %183 }
 0x2be   :  { %188 = vst.msk [vmem:[#allocation8 + $0x4] sm:$0xf] %vm178_vm2, %v184_v45 }
 0x2bf   :  { %362 = shalt.err (!%p359_p0)
}
 0x2c0   :  { %s363_s27 = scalar_lea.hbm %s555_s6, 128 }
 0x2c1   :  { %p364_p1 = scmp.ne.s32.totalorder %s555_s6, %s363_s27  ;;  %p367_p2 = scmp.lt.u32.totalorder %s363_s27, %s555_s6 }
 0x2c3   :  { %p369_p3 = pnand %p367_p2, %p364_p1 }
 0x2c5   :  { %372 = shalt.err (!%p369_p3)
}
 0x2c6   :  { %220 = dma.vmem_to_hbm [thread:$0]  %s215_s21, 128, %s555_s6, [#allocation9], %s407_s0, %s407_s0, %s408_s25   ;;  %v192_v46 = vpop.permute.xlu1 %191 }
 0x2c7   :  { %196 = vst.msk [vmem:[#allocation10 + $0x4] sm:$0xf] %vm178_vm2, %v192_v46  ;;  %s373_s1 = scalar_lea.vmem %s227_s23, 128  ;;  %p378_p5 = scmp.lt.s32.totalorder %s227_s23, %s227_s23 }
 0x2c8   :  { %p374_p4 = scmp.ne.s32.totalorder %s227_s23, %s373_s1  ;;  %p379_p6 = scmp.lt.s32.totalorder %s373_s1, %s373_s1 }
 0x2ca   :  { %p380_p7 = por %p379_p6, %p378_p5 }
 0x2cc   :  { %p381_p8 = pnand %p380_p7, %p374_p4 }
 0x2ce   :  { %384 = shalt.err (!%p381_p8)
}
 0x2cf   :  { %s385_s4 = scalar_lea.hbm %s556_s7, 128 }
 0x2d0   :  { %p386_p9 = scmp.ne.s32.totalorder %s556_s7, %s385_s4  ;;  %p389_p10 = scmp.lt.u32.totalorder %s385_s4, %s556_s7 }
 0x2d2   :  { %p391_p11 = pnand %p389_p10, %p386_p9 }
 0x2d4   :  { %394 = shalt.err (!%p391_p11)
}
 0x2d5   :  { %232 = dma.vmem_to_hbm [thread:$0]  %s227_s23, 128, %s556_s7, [#allocation9], %s407_s0, %s407_s0, %s408_s25  }
 0x2d6   :  { %399 = dma.done.wait [#allocation4], 128  }
 0x2d7   :  { %400 = vsyncadd [#allocation4], 4294967168 }
 0x2d8   :  { %401 = dma.done.wait [#allocation9], 256  }
 0x2d9   :  { %402 = vsyncadd [#allocation9], 4294967040 }
 0x2da   :  { %242 = vsyncpa [#allocation3], 1 }
 0x2db   :  { %243 = vsyncpa [#allocation6], 1 }
 0x2dc   :  { %244 = vsyncpa [#allocation4], 1 }
 0x2dd   :  { %245 = vsyncpa [#allocation9], 1 }

</bundles_post_ra>
